<compile_context>
chip_gen: v6e
topology: v6e:2x2x1
jax: 0.10.0
libtpu: 0.0.40
codegen_flags: <defaults>
</compile_context>

<pallas_src>
import functools
import math

import jax
import jax.numpy as jnp
from jax import lax
from jax.experimental import pallas as pl
from jax.experimental.pallas import tpu as pltpu

MATMUL_DTYPE = jnp.bfloat16   # MXU input dtype; accumulation stays float32.


# ----------------------------------------------------------------------------
# In-kernel helpers (pure values, float32 math)
# ----------------------------------------------------------------------------
def _layernorm(x, gamma, beta, eps=1e-5):
    mean = jnp.mean(x, axis=-1, keepdims=True)
    xc = x - mean
    var = jnp.mean(xc * xc, axis=-1, keepdims=True)
    return xc * lax.rsqrt(var + eps) * gamma + beta


def _gelu_tanh(x):
    c = math.sqrt(2.0 / math.pi)
    return 0.5 * x * (1.0 + jnp.tanh(c * (x + 0.044715 * x * x * x)))


# ----------------------------------------------------------------------------
# Kernel 1: patch embedding (+ cls token + positional embedding)
# ----------------------------------------------------------------------------
def _patch_embed_kernel(p_ref, w_ref, b_ref, cls_ref, pos_ref, o_ref):
    # p_ref: (1, P, D) patches; w_ref: (D, C); b_ref/cls_ref: (1, C); pos_ref: (P+1, C)
    patches = p_ref[0]                                               # (P, D) f32
    emb = jnp.dot(patches.astype(MATMUL_DTYPE), w_ref[...],
                  preferred_element_type=jnp.float32) + b_ref[...]   # (P, C) f32
    o_ref[0, 0:1, :] = cls_ref[...] + pos_ref[0:1, :]
    o_ref[0, 1:, :] = emb + pos_ref[1:, :]


# ----------------------------------------------------------------------------
# Kernel 2: fused transformer block (LN1 -> MHA -> +res -> LN2 -> MLP -> +res)
# ----------------------------------------------------------------------------
def _block_kernel(x_ref, ln1_w_ref, ln1_b_ref, wqkv_ref, bqkv_ref,
                  wproj_ref, bproj_ref, ln2_w_ref, ln2_b_ref,
                  w1_ref, b1_ref, w2_ref, b2_ref, o_ref, *, num_heads, scale):
    x = x_ref[0]                                                     # (N, C) f32
    N, C = x.shape
    hd = C // num_heads

    # ---- LayerNorm 1 ----
    xn = _layernorm(x, ln1_w_ref[...], ln1_b_ref[...])

    # ---- fused QKV projection: one full-width MXU matmul ----
    qkv = jnp.dot(xn.astype(MATMUL_DTYPE), wqkv_ref[...],
                  preferred_element_type=jnp.float32) + bqkv_ref[...]  # (N, 3C)

    # ---- per-head scaled-dot-product attention (static unroll over heads) ----
    heads = []
    for h in range(num_heads):
        q = qkv[:, h * hd:(h + 1) * hd]
        k = qkv[:, C + h * hd:C + (h + 1) * hd]
        v = qkv[:, 2 * C + h * hd:2 * C + (h + 1) * hd]
        s = lax.dot_general(q.astype(MATMUL_DTYPE), k.astype(MATMUL_DTYPE),
                            (((1,), (1,)), ((), ())),
                            preferred_element_type=jnp.float32) * scale  # (N, N)
        # softmax in f32 (max-subtracted); denominator via EUP reciprocal
        s = s - jnp.max(s, axis=-1, keepdims=True)
        p = jnp.exp(s)
        p = p * pl.reciprocal(jnp.sum(p, axis=-1, keepdims=True), approx=True)
        heads.append(jnp.dot(p.astype(MATMUL_DTYPE), v.astype(MATMUL_DTYPE),
                             preferred_element_type=jnp.float32))        # (N, hd)
    attn_cat = jnp.concatenate(heads, axis=-1)                           # (N, C)

    # ---- single full-width output projection + residual (bias folded in) ----
    x = x + jnp.dot(attn_cat.astype(MATMUL_DTYPE), wproj_ref[...],
                    preferred_element_type=jnp.float32) + bproj_ref[...]

    # ---- LayerNorm 2 + MLP + residual ----
    xn2 = _layernorm(x, ln2_w_ref[...], ln2_b_ref[...])
    h1 = jnp.dot(xn2.astype(MATMUL_DTYPE), w1_ref[...],
                 preferred_element_type=jnp.float32) + b1_ref[...]
    h1 = _gelu_tanh(h1)
    x = x + jnp.dot(h1.astype(MATMUL_DTYPE), w2_ref[...],
                    preferred_element_type=jnp.float32) + b2_ref[...]

    o_ref[0] = x                                                       # one store


# ----------------------------------------------------------------------------
# Kernel 3: final LayerNorm on cls token + classification head
# ----------------------------------------------------------------------------
def _head_kernel(x_ref, g_ref, b_ref, wh_ref, bh_ref, o_ref):
    cls = x_ref[0, 0:1, :]                                             # (1, C)
    cls = _layernorm(cls, g_ref[...], b_ref[...])
    o_ref[...] = jnp.dot(cls.astype(MATMUL_DTYPE), wh_ref[...],
                         preferred_element_type=jnp.float32) + bh_ref[...]


# ----------------------------------------------------------------------------
# Wrappers
# ----------------------------------------------------------------------------
def _transformer_block_pallas(x, blk, *, num_heads):
    B, N, C = x.shape
    hidden = blk["fc1_w"].shape[0]
    scale = float(C // num_heads) ** -0.5

    wqkv = blk["qkv_w"].T.astype(MATMUL_DTYPE)      # (C, 3C)
    bqkv = blk["qkv_b"].reshape(1, 3 * C)
    wproj = blk["proj_w"].T.astype(MATMUL_DTYPE)    # (C, C)
    bproj = blk["proj_b"].reshape(1, C)
    w1 = blk["fc1_w"].T.astype(MATMUL_DTYPE)        # (C, hidden)
    b1 = blk["fc1_b"].reshape(1, hidden)
    w2 = blk["fc2_w"].T.astype(MATMUL_DTYPE)        # (hidden, C)
    b2 = blk["fc2_b"].reshape(1, C)
    ln1_w = blk["ln1_w"].reshape(1, C)
    ln1_b = blk["ln1_b"].reshape(1, C)
    ln2_w = blk["ln2_w"].reshape(1, C)
    ln2_b = blk["ln2_b"].reshape(1, C)

    kernel = functools.partial(_block_kernel, num_heads=num_heads, scale=scale)

    return pl.pallas_call(
        kernel,
        out_shape=jax.ShapeDtypeStruct((B, N, C), jnp.float32),
        grid=(B,),
        in_specs=[
            pl.BlockSpec((1, N, C), lambda b: (b, 0, 0)),        # x
            pl.BlockSpec((1, C), lambda b: (0, 0)),              # ln1 gamma
            pl.BlockSpec((1, C), lambda b: (0, 0)),              # ln1 beta
            pl.BlockSpec((C, 3 * C), lambda b: (0, 0)),          # Wqkv
            pl.BlockSpec((1, 3 * C), lambda b: (0, 0)),          # bqkv
            pl.BlockSpec((C, C), lambda b: (0, 0)),              # Wproj
            pl.BlockSpec((1, C), lambda b: (0, 0)),              # bproj
            pl.BlockSpec((1, C), lambda b: (0, 0)),              # ln2 gamma
            pl.BlockSpec((1, C), lambda b: (0, 0)),              # ln2 beta
            pl.BlockSpec((C, hidden), lambda b: (0, 0)),         # W1
            pl.BlockSpec((1, hidden), lambda b: (0, 0)),         # b1
            pl.BlockSpec((hidden, C), lambda b: (0, 0)),         # W2
            pl.BlockSpec((1, C), lambda b: (0, 0)),              # b2
        ],
        out_specs=pl.BlockSpec((1, N, C), lambda b: (b, 0, 0)),
        compiler_params=pltpu.CompilerParams(dimension_semantics=("parallel",)),
    )(x, ln1_w, ln1_b, wqkv, bqkv, wproj, bproj, ln2_w, ln2_b, w1, b1, w2, b2)


def vit_forward_pallas(x_img, params, *, patch_size, num_heads):
    B, IC, H, W = x_img.shape
    ps = patch_size
    C = params["patch_w"].shape[0]
    ph, pw = H // ps, W // ps
    P = ph * pw
    D = IC * ps * ps
    NT = P + 1

    # im2col for the stride==kernel Conv2d (pure layout plumbing).
    patches = (x_img.reshape(B, IC, ph, ps, pw, ps)
               .transpose(0, 2, 4, 1, 3, 5)
               .reshape(B, P, D))

    w_patch = params["patch_w"].reshape(C, D).T.astype(MATMUL_DTYPE)   # (D, C)
    b_patch = params["patch_b"].reshape(1, C)
    cls = params["cls"].reshape(1, C)
    pos = params["pos"].reshape(NT, C)

    x = pl.pallas_call(
        _patch_embed_kernel,
        out_shape=jax.ShapeDtypeStruct((B, NT, C), jnp.float32),
        grid=(B,),
        in_specs=[
            pl.BlockSpec((1, P, D), lambda b: (b, 0, 0)),
            pl.BlockSpec((D, C), lambda b: (0, 0)),
            pl.BlockSpec((1, C), lambda b: (0, 0)),
            pl.BlockSpec((1, C), lambda b: (0, 0)),
            pl.BlockSpec((NT, C), lambda b: (0, 0)),
        ],
        out_specs=pl.BlockSpec((1, NT, C), lambda b: (b, 0, 0)),
        compiler_params=pltpu.CompilerParams(dimension_semantics=("parallel",)),
    )(patches, w_patch, b_patch, cls, pos)

    for blk in params["blocks"]:
        x = _transformer_block_pallas(x, blk, num_heads=num_heads)

    wh = params["head_w"].T.astype(MATMUL_DTYPE)                       # (C, NC)
    NC = wh.shape[1]
    bh = params["head_b"].reshape(1, NC)
    logits = pl.pallas_call(
        _head_kernel,
        out_shape=jax.ShapeDtypeStruct((B, NC), jnp.float32),
        grid=(B,),
        in_specs=[
            pl.BlockSpec((1, NT, C), lambda b: (b, 0, 0)),
            pl.BlockSpec((1, C), lambda b: (0, 0)),
            pl.BlockSpec((1, C), lambda b: (0, 0)),
            pl.BlockSpec((C, NC), lambda b: (0, 0)),
            pl.BlockSpec((1, NC), lambda b: (0, 0)),
        ],
        out_specs=pl.BlockSpec((1, NC), lambda b: (b, 0)),
        compiler_params=pltpu.CompilerParams(dimension_semantics=("parallel",)),
    )(x, params["norm_w"].reshape(1, C), params["norm_b"].reshape(1, C), wh, bh)
    return logits


# ----------------------------------------------------------------------------
# Pure-JAX reference mirroring the PyTorch forward (dropout = identity)
# ----------------------------------------------------------------------------
def _layernorm_ref(x, w, b, eps=1e-5):
    m = jnp.mean(x, axis=-1, keepdims=True)
    v = jnp.mean((x - m) ** 2, axis=-1, keepdims=True)
    return (x - m) / jnp.sqrt(v + eps) * w + b


def vit_forward_reference(x_img, params, *, patch_size, num_heads):
    B = x_img.shape[0]
    ps = patch_size
    C = params["patch_w"].shape[0]
    emb = lax.conv_general_dilated(
        x_img, params["patch_w"], window_strides=(ps, ps), padding="VALID",
        dimension_numbers=("NCHW", "OIHW", "NCHW"))                   # (B, C, ph, pw)
    emb = emb.reshape(B, C, -1).transpose(0, 2, 1) + params["patch_b"]
    x = jnp.concatenate([jnp.broadcast_to(params["cls"], (B, 1, C)), emb], axis=1)
    x = x + params["pos"]

    Hh = num_heads
    hd = C // Hh
    scale = float(hd) ** -0.5
    N = x.shape[1]
    for blk in params["blocks"]:
        xn = _layernorm_ref(x, blk["ln1_w"], blk["ln1_b"])
        qkv = xn @ blk["qkv_w"].T + blk["qkv_b"]
        qkv = qkv.reshape(B, N, 3, Hh, hd).transpose(2, 0, 3, 1, 4)
        q, k, v = qkv[0], qkv[1], qkv[2]
        attn = jnp.einsum("bhnd,bhmd->bhnm", q, k) * scale
        attn = jax.nn.softmax(attn, axis=-1)
        o = jnp.einsum("bhnm,bhmd->bhnd", attn, v)
        o = o.transpose(0, 2, 1, 3).reshape(B, N, C)
        x = x + (o @ blk["proj_w"].T + blk["proj_b"])
        xn2 = _layernorm_ref(x, blk["ln2_w"], blk["ln2_b"])
        h1 = _gelu_tanh(xn2 @ blk["fc1_w"].T + blk["fc1_b"])
        x = x + (h1 @ blk["fc2_w"].T + blk["fc2_b"])

    x = _layernorm_ref(x, params["norm_w"], params["norm_b"])
    return x[:, 0] @ params["head_w"].T + params["head_b"]


# ----------------------------------------------------------------------------
# Parameter construction (PyTorch layout conventions, float32)
# ----------------------------------------------------------------------------
def make_params(key, *, img_size, patch_size, in_channels, embed_dim, depth,
                num_heads, num_classes, mlp_ratio):
    C = embed_dim
    hidden = int(C * mlp_ratio)
    NT = (img_size // patch_size) ** 2 + 1

    def nrm(k, shape, s=0.02):
        return (s * jax.random.normal(k, shape)).astype(jnp.float32)

    ks = jax.random.split(key, 8 + depth)
    params = {
        "patch_w": nrm(ks[0], (C, in_channels, patch_size, patch_size), 0.05),
        "patch_b": nrm(ks[1], (C,)),
        "cls": jax.random.normal(ks[2], (1, 1, C), dtype=jnp.float32),
        "pos": jax.random.normal(ks[3], (1, NT, C), dtype=jnp.float32),
        "norm_w": 1.0 + nrm(ks[4], (C,), 0.1),
        "norm_b": nrm(ks[5], (C,), 0.1),
        "head_w": nrm(ks[6], (num_classes, C)),
        "head_b": nrm(ks[7], (num_classes,)),
        "blocks": [],
    }
    for i in range(depth):
        bk = jax.random.split(ks[8 + i], 12)
        params["blocks"].append({
            "ln1_w": 1.0 + nrm(bk[0], (C,), 0.1), "ln1_b": nrm(bk[1], (C,), 0.1),
            "qkv_w": nrm(bk[2], (3 * C, C)), "qkv_b": nrm(bk[3], (3 * C,)),
            "proj_w": nrm(bk[4], (C, C)), "proj_b": nrm(bk[5], (C,)),
            "ln2_w": 1.0 + nrm(bk[6], (C,), 0.1), "ln2_b": nrm(bk[7], (C,), 0.1),
            "fc1_w": nrm(bk[8], (hidden, C)), "fc1_b": nrm(bk[9], (hidden,)),
            "fc2_w": nrm(bk[10], (C, hidden)), "fc2_b": nrm(bk[11], (C,)),
        })
    return params


if __name__ == "__main__":
    # Small ViT config: 16x16 RGB image, 4x4 patches -> 17 tokens, embed_dim=128.
    B, IMG, PS, IC = 2, 16, 4, 3
    EMBED, DEPTH, HEADS, NUM_CLASSES, MLP_RATIO = 128, 2, 4, 100, 4.0

    key = jax.random.PRNGKey(0)
    k_params, k_img = jax.random.split(key)
    params = make_params(k_params, img_size=IMG, patch_size=PS, in_channels=IC,
                         embed_dim=EMBED, depth=DEPTH, num_heads=HEADS,
                         num_classes=NUM_CLASSES, mlp_ratio=MLP_RATIO)
    x_img = jax.random.normal(k_img, (B, IC, IMG, IMG), dtype=jnp.float32)

    out = vit_forward_pallas(x_img, params, patch_size=PS, num_heads=HEADS)
    out = jax.block_until_ready(out)

    ref = vit_forward_reference(x_img, params, patch_size=PS, num_heads=HEADS)
    assert out.shape == (B, NUM_CLASSES)
    # bf16 matmul inputs + approx reciprocal -> loosened tolerance vs f32 reference.
    max_diff = float(jnp.max(jnp.abs(out - ref)))
    assert jnp.allclose(out, ref, atol=2e-2, rtol=2e-2), f"mismatch: max|diff|={max_diff}"

    print("KERNEL_OK")
</pallas_src>

<mosaic_0001>
module attributes {stable_mosaic.version = 11 : i64} {
  func.func @_patch_embed_kernel(%arg0: i32, %arg1: memref<1x16x48xf32, #tpu.memory_space<vmem>>, %arg2: memref<48x128xbf16, #tpu.memory_space<vmem>>, %arg3: memref<1x128xf32, #tpu.memory_space<vmem>>, %arg4: memref<1x128xf32, #tpu.memory_space<vmem>>, %arg5: memref<17x128xf32, #tpu.memory_space<vmem>>, %arg6: memref<1x17x128xf32, #tpu.memory_space<vmem>>) attributes {dimension_semantics = [#tpu.dimension_semantics<parallel>], iteration_bounds = array<i64: 2>, scalar_prefetch = 0 : i64, scratch_operands = 0 : i64, tpu.core_type = #tpu.core_type<tc>, window_params = [{transform_indices = @transform_0, window_bounds = array<i64: 1, 16, 48>}, {pipeline_mode = #tpu.pipeline_mode<synchronous>, transform_indices = @transform_1, window_bounds = array<i64: 48, 128>}, {pipeline_mode = #tpu.pipeline_mode<synchronous>, transform_indices = @transform_2, window_bounds = array<i64: 1, 128>}, {pipeline_mode = #tpu.pipeline_mode<synchronous>, transform_indices = @transform_3, window_bounds = array<i64: 1, 128>}, {pipeline_mode = #tpu.pipeline_mode<synchronous>, transform_indices = @transform_4, window_bounds = array<i64: 17, 128>}, {transform_indices = @transform_5, window_bounds = array<i64: 1, 17, 128>}]} {
    %c0 = arith.constant 0 : index
    %c0_0 = arith.constant 0 : index
    %c0_1 = arith.constant 0 : index
    %0 = vector.load %arg1[%c0, %c0_0, %c0_1] : memref<1x16x48xf32, #tpu.memory_space<vmem>>, vector<1x16x48xf32>
    %1 = vector.shape_cast %0 : vector<1x16x48xf32> to vector<16x48xf32>
    %2 = arith.truncf %1 : vector<16x48xf32> to vector<16x48xbf16>
    %c0_2 = arith.constant 0 : index
    %c0_3 = arith.constant 0 : index
    %3 = vector.load %arg2[%c0_2, %c0_3] : memref<48x128xbf16, #tpu.memory_space<vmem>>, vector<48x128xbf16>
    %cst = arith.constant dense<0.000000e+00> : vector<16x128xf32>
    %4 = tpu.matmul %2, %3, %cst {dimension_numbers = #tpu.dot_dimension_numbers<[1], [0], [0], [1], [0, 0, 1, 1], [], []>} : vector<16x48xbf16>, vector<48x128xbf16>, vector<16x128xf32> -> vector<16x128xf32>
    %c0_4 = arith.constant 0 : index
    %c0_5 = arith.constant 0 : index
    %5 = vector.load %arg3[%c0_4, %c0_5] : memref<1x128xf32, #tpu.memory_space<vmem>>, vector<1x128xf32>
    %6 = vector.broadcast %5 : vector<1x128xf32> to vector<16x128xf32>
    %7 = arith.addf %4, %6 : vector<16x128xf32>
    %c0_6 = arith.constant 0 : index
    %c0_7 = arith.constant 0 : index
    %8 = vector.load %arg4[%c0_6, %c0_7] : memref<1x128xf32, #tpu.memory_space<vmem>>, vector<1x128xf32>
    %c0_8 = arith.constant 0 : index
    %c0_9 = arith.constant 0 : index
    %9 = vector.load %arg5[%c0_8, %c0_9] : memref<17x128xf32, #tpu.memory_space<vmem>>, vector<1x128xf32>
    %10 = arith.addf %8, %9 : vector<1x128xf32>
    %c0_10 = arith.constant 0 : index
    %c0_11 = arith.constant 0 : index
    %c0_12 = arith.constant 0 : index
    %11 = vector.load %arg6[%c0_10, %c0_11, %c0_12] : memref<1x17x128xf32, #tpu.memory_space<vmem>>, vector<1x1x128xf32>
    %12 = vector.shape_cast %11 : vector<1x1x128xf32> to vector<1x128xf32>
    %13 = vector.shape_cast %10 : vector<1x128xf32> to vector<1x1x128xf32>
    tpu.vector_store %arg6[%c0_10, %c0_11, %c0_12], %13 {strides = array<i32>} : memref<1x17x128xf32, #tpu.memory_space<vmem>>, vector<1x1x128xf32>,
    %c1 = arith.constant 1 : index
    %c0_13 = arith.constant 0 : index
    %14 = vector.load %arg5[%c1, %c0_13] : memref<17x128xf32, #tpu.memory_space<vmem>>, vector<16x128xf32>
    %15 = arith.addf %7, %14 : vector<16x128xf32>
    %c0_14 = arith.constant 0 : index
    %c1_15 = arith.constant 1 : index
    %c0_16 = arith.constant 0 : index
    %16 = vector.load %arg6[%c0_14, %c1_15, %c0_16] : memref<1x17x128xf32, #tpu.memory_space<vmem>>, vector<1x16x128xf32>
    %17 = vector.shape_cast %16 : vector<1x16x128xf32> to vector<16x128xf32>
    %18 = vector.shape_cast %15 : vector<16x128xf32> to vector<1x16x128xf32>
    tpu.vector_store %arg6[%c0_14, %c1_15, %c0_16], %18 {strides = array<i32>} : memref<1x17x128xf32, #tpu.memory_space<vmem>>, vector<1x16x128xf32>,
    return
  }
  func.func @transform_0(%arg0: i32) -> (i32, i32, i32) {
    %c0_i32 = arith.constant 0 : i32
    %c0_i32_0 = arith.constant 0 : i32
    %c0_i32_1 = arith.constant 0 : i32
    return %arg0, %c0_i32, %c0_i32_0 : i32, i32, i32
  }
  func.func @transform_1(%arg0: i32) -> (i32, i32) {
    %c0_i32 = arith.constant 0 : i32
    %c0_i32_0 = arith.constant 0 : i32
    %c0_i32_1 = arith.constant 0 : i32
    return %c0_i32, %c0_i32_0 : i32, i32
  }
  func.func @transform_2(%arg0: i32) -> (i32, i32) {
    %c0_i32 = arith.constant 0 : i32
    %c0_i32_0 = arith.constant 0 : i32
    %c0_i32_1 = arith.constant 0 : i32
    return %c0_i32, %c0_i32_0 : i32, i32
  }
  func.func @transform_3(%arg0: i32) -> (i32, i32) {
    %c0_i32 = arith.constant 0 : i32
    %c0_i32_0 = arith.constant 0 : i32
    %c0_i32_1 = arith.constant 0 : i32
    return %c0_i32, %c0_i32_0 : i32, i32
  }
  func.func @transform_4(%arg0: i32) -> (i32, i32) {
    %c0_i32 = arith.constant 0 : i32
    %c0_i32_0 = arith.constant 0 : i32
    %c0_i32_1 = arith.constant 0 : i32
    return %c0_i32, %c0_i32_0 : i32, i32
  }
  func.func @transform_5(%arg0: i32) -> (i32, i32, i32) {
    %c0_i32 = arith.constant 0 : i32
    %c0_i32_0 = arith.constant 0 : i32
    %c0_i32_1 = arith.constant 0 : i32
    return %arg0, %c0_i32, %c0_i32_0 : i32, i32, i32
  }
}

</mosaic_0001>

<bundles_post_ra>
// kernel: tpu_custom_call.1
= control target key start
LH: loop header
LB: loop body
LE: loop exit
PB: predicated region body
PF: predicated region fallthrough
CT: control target
= control target key end

     0   :  { %10 = vsyncpa [#allocation3], 0  ;;  %s863_s0 = inlined_call_operand.hbm [shape: f32[2,16,48], index: 0, kind: input, shape index: {}]   ;;  %s864_s1 = inlined_call_operand.hbm [shape: bf16[48,128], index: 1, kind: input, shape index: {}]   ;;  %s865_s2 = inlined_call_operand.vmem [shape: f32[1,128], index: 2, kind: input, shape index: {}]   ;;  %s866_s3 = inlined_call_operand.vmem [shape: f32[1,128], index: 3, kind: input, shape index: {}]   ;;  %s867_s4 = inlined_call_operand.hbm [shape: f32[17,128], index: 4, kind: input, shape index: {}]   ;;  %s868_s5 = inlined_call_operand.vmem [shape: f32[2,17,128], index: 5, kind: output, shape index: {}]  }
   0x1   :  { %12 = vsyncpa [#allocation3 + $0x1], 0 }
   0x2   :  { %13 = vsyncpa [#allocation5], 0  ;;  %s714_s18 = smov 0   ;;  %s716_s19 = smov 0  }
   0x3   :  { %s718_s20 = smov 0   ;;  %s720_s21 = smov 0  }
   0x4 LB: > { %s733_s22 = sadd.s32 4294967295, %s673_s21   ;;  %p39_p0 = scmp.ne.s32.totalorder %s665_s19, %s661_s18  ;;  %s673_s21 = sphi %s720_s21, %s884_s21   ;;  %s669_s20 = sphi %s718_s20, %s883_s20   ;;  %s665_s19 = sphi %s716_s19, %s882_s19   ;;  %s661_s18 = sphi %s714_s18, %s881_s18  }
   0x5   : > { %p869_p1 = scmp.eq.s32.totalorder %s733_s22, 0  ;;  %p451_p2 = scmp.ge.s32.totalorder %s673_s21, 1 }
   0x6   : > { %p160_p3 = scmp.lt.s32.totalorder %s673_s21, 3  ;;  %s675_s25 = smov [#allocation4]  }
   0x7   : > { %p741_p4 = por %p869_p1, %p39_p0  ;;  %s172_s26 = sshll.u32 %s675_s25, 4  ;;  %s173_s26 = int_to_ptr.vmem [resolvable:$true] %s172_s26 }
   0x8   : > { %p745_p5 = pnand %p451_p2, %p160_p3  ;;  %s676_s28 = smov [#allocation6]  }
   0x9   : > { %s872_s23 = scalar_select %p741_p4, 1, 0 }
   0xa   : > { %s873_s24 = scalar_select %p745_p5, 1, 0 }
   0xb   : > { %p496_p6 = pneg %p745_p5  ;;  %s191_s29 = sshll.u32 %s676_s28, 4  ;;  %s192_s29 = int_to_ptr.vmem [resolvable:$true] %s191_s29 }
   0xc   : > { %s566_s30 = scalar_lea.vmem %s173_s26, 384  ;;  %p574_p12 = scmp.lt.s32.totalorder %s173_s26, %s173_s26 }
   0xd   : > { %p753_p7 = pnand %p496_p6, %p869_p1  ;;  %p567_p9 = scmp.ne.s32.totalorder %s173_s26, %s566_s30 }
   0xe   : > { %p575_p13 = scmp.lt.s32.totalorder %s566_s30, %s566_s30 }
   0xf   : > { %p557_p8 = pneg %p753_p7 }
  0x10   : > { %p576_p0 = por %p575_p13, %p574_p12 }
  0x11   : > { %p569_p10 = pnand %p567_p9, %p557_p8 }
  0x13   : > { %p570_p11 = pneg %p569_p10 }
  0x15   : > { %p577_p2 = pnand %p576_p0, %p570_p11 }
  0x17   : > { %580 = shalt.err (!%p577_p2)
}
  0x18   : > { %s677_s6 = smov 64   ;;  %s678_s7 = smov 4  }
  0x19   : > { %499 = dma.hbm_to_vmem [thread:$0]  (!%p753_p7), %s864_s1, 384, %s173_s26, [#allocation5], %s677_s6, %s677_s6, %s678_s7  }
  0x1a   : > { %s592_s10 = scalar_lea.vmem %s192_s29, 384  ;;  %p600_p10 = scmp.lt.s32.totalorder %s192_s29, %s192_s29 }
  0x1b   : > { %p593_p3 = scmp.ne.s32.totalorder %s192_s29, %s592_s10  ;;  %p601_p1 = scmp.lt.s32.totalorder %s592_s10, %s592_s10 }
  0x1d   : > { %p595_p6 = pnand %p593_p3, %p557_p8  ;;  %p602_p12 = por %p601_p1, %p600_p10 }
  0x1f   : > { %p596_p9 = pneg %p595_p6 }
  0x21   : > { %p603_p11 = pnand %p602_p12, %p596_p9 }
  0x23   : > { %606 = shalt.err (!%p603_p11)
}
  0x24   : > { %s679_s11 = smov 128   ;;  %s680_s12 = smov 8  }
  0x25   : > { %502 = dma.hbm_to_vmem [thread:$0]  (!%p753_p7), %s867_s4, 384, %s192_s29, [#allocation5], %s679_s11, %s679_s11, %s680_s12  }
  0x26   : > { %s779_s15 = sadd.s32 1, %s673_s21   ;;  %s26_s17 = sadd.s32 1, %s669_s20 }
  0x27   : > { %s23_s16 = ssub.s32 %s673_s21, %s779_s15  ;;  %p33_p8 = scmp.ne.s32.totalorder %s669_s20, %s665_s19 }
  0x28   : > { %p24_p1 = scmp.eq.s32.totalorder %s23_s16, 0  ;;  %p34_p13 = scmp.eq.s32.totalorder %s673_s21, 0 }
  0x29   : > { %p509_p2 = scmp.lt.s32.totalorder %s673_s21, 2  ;;  %s205_s25 = sand.u32 1, %s669_s20  }
  0x2a   : > { %s788_s18 = scalar_select %p24_p1, %s669_s20, %s26_s17  }
  0x2b   : > { %p35_p0 = por %p34_p13, %p33_p8  ;;  %s470_s26 = sshll.u32 %s673_s21, 8 }
  0x2c   : > { %s455_s27 = sshll.u32 %s205_s25, 4  ;;  %s796_s6 = scalar_lea.hbm %s863_s0, %s470_s26 }
  0x2d   : > { %s209_s29 = scalar_lea.vmem [#allocation2], %s455_s27  ;;  %p798_p7 = pnand %p509_p2, %p35_p0 }
  0x2e   : > { %s216_s7 = sshll.u32 %s209_s29, 4  ;;  %s804_s9 = scalar_lea.sflag [#allocation3], %s205_s25  ;;  %s802_s7 = int_to_ptr.vmem [resolvable:$true] %s216_s7 }
  0x2f   : > { %s607_s21 = scalar_lea.hbm %s796_s6, 256  ;;  %p609_p6 = pneg %p798_p7 }
  0x30   : > { %p608_p3 = scmp.ne.s32.totalorder %s796_s6, %s607_s21  ;;  %s612_s14 = scalar_lea.hbm %s863_s0, 512 }
  0x31   : > { %p613_p12 = scmp.lt.s32.totalorder %s796_s6, %s863_s0  ;;  %p614_p11 = scmp.lt.s32.totalorder %s612_s14, %s607_s21 }
  0x32   : > { %p610_p9 = pnand %p609_p6, %p608_p3 }
  0x33   : > { %p615_p1 = por %p614_p11, %p613_p12 }
  0x34   : > { %p611_p10 = pneg %p610_p9 }
  0x36   : > { %p616_p8 = pnand %p615_p1, %p611_p10 }
  0x38   : > { %619 = shalt.err (!%p616_p8)
}
  0x39   : > { %s620_s25 = scalar_lea.vmem %s802_s7, 256  ;;  %s681_s26 = smov [#allocation2]  }
  0x3a   : > { %p621_p13 = scmp.ne.s32.totalorder %s802_s7, %s620_s25  ;;  %s625_s27 = sshll.u32 %s681_s26, 4  ;;  %s626_s27 = int_to_ptr.vmem [resolvable:$false] %s625_s27 }
  0x3b   : > { %s627_s28 = scalar_lea.vmem %s626_s27, 512  ;;  %p628_p3 = scmp.lt.s32.totalorder %s802_s7, %s626_s27 }
  0x3c   : > { %p623_p0 = pnand %p621_p13, %p609_p6  ;;  %p629_p9 = scmp.lt.s32.totalorder %s627_s28, %s620_s25 }
  0x3e   : > { %p624_p2 = pneg %p623_p0  ;;  %p630_p4 = por %p629_p9, %p628_p3 }
  0x40   : > { %p631_p5 = pnand %p630_p4, %p624_p2 }
  0x42   : > { %634 = shalt.err (!%p631_p5)
}
  0x43   : > { %506 = dma.hbm_to_vmem [thread:$0]  (!%p798_p7), %s796_s6, 256, %s802_s7, %s804_s9, %s679_s11, %s679_s11, %s680_s12  }
  0x44   : > { %p876_p6 = scmp.ne.s32.totalorder %s873_s24, 0 }
  0x45   : > { %s230_s30 = sand.u32 (!%p876_p6), 1, %s665_s19   ;;  %p877_p4 = scmp.ne.s32.totalorder (!%p876_p6), %s872_s23, 0 }
  0x46   : > { %228 = sbr.rel (%p876_p6) target bundleno = 294 (0x126), region = 40  ;;  %s459_s29 = sshll.u32 (!%p876_p6), %s230_s30, 4 }
  0x47   : > { %s231_s21 = scalar_lea.sflag (!%p876_p6), [#allocation3], %s230_s30  ;;  %s234_s10 = scalar_lea.vmem (!%p876_p6), [#allocation2], %s459_s29 }
  0x4b   : > { %652 = dma.done.wait (%p877_p4), %s231_s21, 256  }
  0x4c   : > { %654 = vsyncadd (%p877_p4), %s231_s21, 4294967040  ;;  %p878_p5 = scmp.eq.s32.totalorder %s733_s22, 0 }
  0x4e   : > { %656 = dma.done.wait (%p878_p5), [#allocation5], 768   ;;  %p879_p10 = pmov %p878_p5 }
  0x4f   : > { %v682_v0 = vmov 0.0   ;;  %vm683_vm0 = vmmov 0   ;;  %v552_v1 = vld [vmem:[#allocation4 + $0x10] sm:$0xff]   ;;  %v553_v2 = vld [vmem:[#allocation4 + $0x8] sm:$0xff]   ;;  %v554_v3 = vld [vmem:[#allocation4] sm:$0xff]   ;;  %vm309_vm1 = vcmask 392192  }
  0x50   : > { %658 = vsyncadd (%p879_p10), [#allocation5], 4294966528  ;;  %475 = vmatprep.subr.bf16.mxu0 %v682_v0  ;;  %481 = vmatprep.mubr.msk.bf16.mxu0 %vm683_vm0, %v682_v0  ;;  %v275_v4 = vld [vmem:[%s234_s10] sm:$0xff]  ;;  %v276_v5 = vld [vmem:[%s234_s10 + $0x8] sm:$0xff]  ;;  %p269_p7 = scmp.lt.s32.totalorder %s733_s22, 1 }
  0x51   : > { %476 = vmatpush3.bf16.msra.mxu0 %v552_v1  ;;  %v277_v6 = vpack.c.bf16 %v276_v5, %v275_v4  ;;  %v354_v7 = vld [vmem:[%s866_s3] sm:$0x1]  ;;  %v355_v8 = vld [vmem:[#allocation6] sm:$0x1]  ;;  %v359_v17 = vld [vmem:[#allocation6 + $0x9] sm:$0xff] }
  0x52   : > { %477 = vmatprep.subr.bf16.mxu0 %v682_v0  ;;  %s886_s22 = smov (!%p269_p7, %s733_s22), 1  ;;  %v356_v9 = vadd.f32 %v355_v8, %v354_v7  ;;  %v463_v10 = vld [vmem:[%s865_s2] ss:$0 sm:$0xff] }
  0x53   : > { %s485_s23 = smul.u32 24, %s886_s22  ;;  %v358_v12 = vld [vmem:[#allocation6 + $0x1] sm:$0xff] }
  0x55   : > { %478 = vmatpush3.bf16.msra.mxu0 %v553_v2  ;;  %s273_s7 = scalar_lea.vmem %s868_s5, %s485_s23 }
  0x56   : > { %479 = vmatprep.subr.bf16.mxu0 %v682_v0  ;;  %357 = vst [vmem:[%s273_s7] sm:$0x1] %v356_v9 }
  0x59   : > { %480 = vmatpush3.bf16.msra.mxu0 %v554_v3 }
  0x5c   : > { %482 = vmatmul.mubr.msk.bf16.vlgmr.msra.gmra.mxu0 %vm309_vm1, %v277_v6 }
 0x11c   : > { %v347_v11 = vpop.f32.mrf.mxu0 }
 0x11d   : > { %v348_v13 = vadd.f32 %v463_v10, %v347_v11 }
 0x11e   : > { %v483_v14 = vpop.f32.mrf.mxu0 }
 0x11f   : > { %v360_v15 = vadd.f32 %v358_v12, %v348_v13 }
 0x120   : > { %v350_v16 = vpop.f32.mrf.mxu0 }
 0x121   : > { %362 = vst [vmem:[%s273_s7 + $0x1] sm:$0xff] %v360_v15  ;;  %v351_v18 = vadd.f32 %v463_v10, %v350_v16 }
 0x122   : > { %v484_v19 = vpop.f32.mrf.mxu0 }
 0x123   : > { %v361_v20 = vadd.f32 %v359_v17, %v351_v18 }
 0x125   : > { %363 = vst [vmem:[%s273_s7 + $0x9] sm:$0xff] %v361_v20 }
 0x126 PF: > { %s880_s22 = smov %s788_s18  ;;  %p16_p12 = scmp.ge.s32.totalorder %s779_s15, 4  }
 0x127   : > { %s881_s18 = smov %s665_s19  ;;  %s882_s19 = smov %s669_s20 }
 0x128   : > { %s883_s20 = smov %s880_s22  ;;  %s884_s21 = smov %s779_s15 }
 0x129   :  { %18 = sbr.rel (!%p16_p12) target bundleno = 4 (0x4), region = 88 }
 0x12e   :  { %385 = vsyncpa [#allocation3], 1 }
 0x12f   :  { %387 = vsyncpa [#allocation3 + $0x1], 1 }
 0x130   :  { %388 = vsyncpa [#allocation5], 1 }

</bundles_post_ra>
